<compile_context>
chip_gen: v7x
topology: tpu7x:2x2x1
jax: 0.10.0
libtpu: 0.0.40
codegen_flags: <defaults>
</compile_context>

<pallas_src>
import jax
import jax.numpy as jnp
from jax.experimental import pallas as pl
from jax.experimental.pallas import tpu as pltpu


def _gumbel_adjacency_kernel(log_alpha_ref, u_ref, out_ref):
    # Per-entry threshold: the hard sample is 1 iff u > sigmoid(-log_alpha).
    # (tau only rescales the pre-sigmoid logit, so it never flips the sign and
    #  therefore never changes the hard forward value.)
    thr = jax.nn.sigmoid(-log_alpha_ref[...])               # (1, R*C) — tiny, per tile
    out_ref[...] = (u_ref[...] > thr).astype(jnp.float32)   # (tb, R*C) lane-dense compare


def _pick_batch_tile(bs, rc, target_bytes=2 << 20):
    """Batch tile sized so in+out double-buffered blocks stay well under the
    scoped VMEM limits (16 MiB v5e / 32 MiB v6e / 32-of-64 MiB v7x)."""
    tb = max(1, target_bytes // (rc * 4))
    tb = max(8, (tb // 8) * 8)      # keep the sublane dim a multiple of 8
    return min(bs, tb)


def gumbel_adjacency_forward(log_alpha, bs, key, tau=1.0):
    """Pallas implementation of GumbelAdjacency.forward(bs).

    log_alpha: (num_rows, num_cols) float32 parameter.
    bs:        python int, batch size.
    key:       jax.random key used for the uniform noise (deterministic).
    tau:       temperature; does not affect the hard (forward) value for tau > 0.
    returns:   (bs, num_rows, num_cols) float32 hard Gumbel-sigmoid samples.
    """
    del tau  # tau > 0 cancels out of the hard forward value (see header comment).
    num_rows, num_cols = log_alpha.shape
    rc = num_rows * num_cols

    # Host-side uniform noise, already in the lane-dense (bs, R*C) layout.
    u = jax.random.uniform(key, (bs, rc), dtype=jnp.float32)
    log_alpha_flat = log_alpha.reshape(1, rc).astype(jnp.float32)

    tb = _pick_batch_tile(bs, rc)
    grid = (pl.cdiv(bs, tb),)

    out_flat = pl.pallas_call(
        _gumbel_adjacency_kernel,
        out_shape=jax.ShapeDtypeStruct((bs, rc), jnp.float32),
        grid=grid,
        in_specs=[
            pl.BlockSpec((1, rc), lambda i: (0, 0)),    # log_alpha, same block every step
            pl.BlockSpec((tb, rc), lambda i: (i, 0)),   # uniform-noise batch tile
        ],
        out_specs=pl.BlockSpec((tb, rc), lambda i: (i, 0)),
        compiler_params=pltpu.CompilerParams(
            dimension_semantics=("parallel",),          # shard batch tiles across TCs (v7x)
        ),
    )(log_alpha_flat, u)

    return out_flat.reshape(bs, num_rows, num_cols)


if __name__ == "__main__":
    # Module configuration (small, consistent with GumbelAdjacency(num_rows=16)).
    num_rows, num_cols = 16, 16
    bs = 8
    tau = 1.0

    # Deterministic parameter init per reset_parameters(): log_alpha = 5.0 everywhere.
    log_alpha = jnp.full((num_rows, num_cols), 5.0, dtype=jnp.float32)

    # Deterministic noise key.
    key = jax.random.PRNGKey(0)

    adj = gumbel_adjacency_forward(log_alpha, bs, key, tau=tau)
    adj = jax.block_until_ready(adj)

    # Shape / dtype / hard {0,1} sanity.
    assert adj.shape == (bs, num_rows, num_cols)
    assert adj.dtype == jnp.float32
    assert bool(jnp.all((adj == 0.0) | (adj == 1.0)))
    # With log_alpha = 5, P(one) = sigmoid(5) ~ 0.993.
    assert float(adj.mean()) > 0.9

    # Parity with the reference gumbel_sigmoid(hard=True) forward using the
    # exact same uniforms (allow a couple of boundary-ulp disagreements where
    # u lands within float32 rounding of the decision threshold).
    u_ref = jax.random.uniform(key, (bs, num_rows * num_cols), dtype=jnp.float32)
    noise = jnp.log(u_ref) - jnp.log1p(-u_ref)
    y_soft = jax.nn.sigmoid((log_alpha.reshape(1, -1) + noise) / tau)
    ref = (y_soft > 0.5).astype(jnp.float32).reshape(bs, num_rows, num_cols)
    n_mismatch = int(jnp.sum(adj != ref))
    assert n_mismatch <= 2, f"parity mismatch count {n_mismatch}"

    print("KERNEL_OK")
</pallas_src>

<mosaic_0001>
module attributes {stable_mosaic.version = 11 : i64} {
  func.func @_gumbel_adjacency_kernel(%arg0: i32, %arg1: memref<1x256xf32, #tpu.memory_space<vmem>>, %arg2: memref<8x256xf32, #tpu.memory_space<vmem>>, %arg3: memref<8x256xf32, #tpu.memory_space<vmem>>) attributes {dimension_semantics = [#tpu.dimension_semantics<parallel>], iteration_bounds = array<i64: 1>, scalar_prefetch = 0 : i64, scratch_operands = 0 : i64, tpu.core_type = #tpu.core_type<tc>, window_params = [{pipeline_mode = #tpu.pipeline_mode<synchronous>, transform_indices = @transform_0, window_bounds = array<i64: 1, 256>}, {transform_indices = @transform_1, window_bounds = array<i64: 8, 256>}, {transform_indices = @transform_2, window_bounds = array<i64: 8, 256>}]} {
    %c0 = arith.constant 0 : index
    %c0_0 = arith.constant 0 : index
    %0 = vector.load %arg1[%c0, %c0_0] : memref<1x256xf32, #tpu.memory_space<vmem>>, vector<1x256xf32>
    %cst = arith.constant 0.000000e+00 : f32
    %1 = vector.broadcast %cst : f32 to vector<1x256xf32>
    %2 = arith.subf %1, %0 : vector<1x256xf32>
    %3 = arith.negf %2 : vector<1x256xf32>
    %4 = math.exp %3 : vector<1x256xf32>
    %cst_1 = arith.constant 1.000000e+00 : f32
    %5 = vector.broadcast %cst_1 : f32 to vector<1x256xf32>
    %6 = arith.addf %5, %4 : vector<1x256xf32>
    %7 = arith.divf %5, %6 : vector<1x256xf32>
    %c0_2 = arith.constant 0 : index
    %c0_3 = arith.constant 0 : index
    %8 = vector.load %arg2[%c0_2, %c0_3] : memref<8x256xf32, #tpu.memory_space<vmem>>, vector<8x256xf32>
    %9 = vector.broadcast %7 : vector<1x256xf32> to vector<8x256xf32>
    %10 = arith.cmpf ogt, %8, %9 : vector<8x256xf32>
    %11 = arith.extui %10 : vector<8x256xi1> to vector<8x256xi32>
    %12 = arith.sitofp %11 : vector<8x256xi32> to vector<8x256xf32>
    %c0_4 = arith.constant 0 : index
    %c0_5 = arith.constant 0 : index
    %13 = vector.load %arg3[%c0_4, %c0_5] : memref<8x256xf32, #tpu.memory_space<vmem>>, vector<8x256xf32>
    tpu.vector_store %arg3[%c0_4, %c0_5], %12 {strides = array<i32>} : memref<8x256xf32, #tpu.memory_space<vmem>>, vector<8x256xf32>,
    return
  }
  func.func @transform_0(%arg0: i32) -> (i32, i32) {
    %c0_i32 = arith.constant 0 : i32
    %c0_i32_0 = arith.constant 0 : i32
    %c0_i32_1 = arith.constant 0 : i32
    return %c0_i32, %c0_i32_0 : i32, i32
  }
  func.func @transform_1(%arg0: i32) -> (i32, i32) {
    %c0_i32 = arith.constant 0 : i32
    %c0_i32_0 = arith.constant 0 : i32
    return %arg0, %c0_i32 : i32, i32
  }
  func.func @transform_2(%arg0: i32) -> (i32, i32) {
    %c0_i32 = arith.constant 0 : i32
    %c0_i32_0 = arith.constant 0 : i32
    return %arg0, %c0_i32 : i32, i32
  }
}

</mosaic_0001>

<bundles_post_ra>
// kernel: tpu_custom_call.1
= control target key start
LH: loop header
LB: loop body
LE: loop exit
PB: predicated region body
PF: predicated region fallthrough
CT: control target
= control target key end

     0   :  { %7 = vsyncpa [#allocation3], 0  ;;  %s219_s0 = inlined_call_operand.hbm [shape: f32[1,256], index: 0, kind: input, shape index: {}]   ;;  %s220_s1 = inlined_call_operand.hbm [shape: f32[8,256], index: 1, kind: input, shape index: {}]   ;;  %s221_s2 = inlined_call_operand.hbm [shape: f32[8,256], index: 2, kind: output, shape index: {}]  }
   0x1   :  { %8 = vsyncpa [#allocation6], 0 }
   0x2   :  { %9 = vsyncpa [#allocation4], 0  ;;  %s164_s9 = smov [#allocation2]   ;;  %s165_s11 = smov [#allocation5]  }
   0x3   :  { %s16_s10 = sshll.u32 %s164_s9, 4  ;;  %s26_s12 = sshll.u32 %s165_s11, 4  ;;  %s17_s10 = int_to_ptr.vmem [resolvable:$true] %s16_s10  ;;  %s27_s12 = int_to_ptr.vmem [resolvable:$true] %s26_s12 }
   0x4   :  { %s92_s15 = scalar_lea.hbm %s219_s0, 32 }
   0x5   :  { %p93_p0 = scmp.ne.s32.totalorder %s219_s0, %s92_s15  ;;  %p96_p1 = scmp.lt.u32.totalorder %s92_s15, %s219_s0 }
   0x7   :  { %p98_p2 = pnand %p96_p1, %p93_p0 }
   0x9   :  { %101 = shalt.err (!%p98_p2)
}
   0xa   :  { %s102_s20 = scalar_lea.vmem %s17_s10, 32  ;;  %p107_p4 = scmp.lt.s32.totalorder %s17_s10, %s17_s10 }
   0xb   :  { %p103_p3 = scmp.ne.s32.totalorder %s17_s10, %s102_s20  ;;  %p108_p5 = scmp.lt.s32.totalorder %s102_s20, %s102_s20 }
   0xd   :  { %p109_p6 = por %p108_p5, %p107_p4 }
   0xf   :  { %p110_p7 = pnand %p109_p6, %p103_p3 }
  0x11   :  { %113 = shalt.err (!%p110_p7)
}
  0x12   :  { %19 = dma.hbm_to_vmem [thread:$0]  %s219_s0, 32, %s17_s10, [#allocation3]  }
  0x13   :  { %s114_s25 = scalar_lea.hbm %s220_s1, 256 }
  0x14   :  { %p115_p8 = scmp.ne.s32.totalorder %s220_s1, %s114_s25  ;;  %p118_p9 = scmp.lt.u32.totalorder %s114_s25, %s220_s1 }
  0x16   :  { %p120_p10 = pnand %p118_p9, %p115_p8 }
  0x18   :  { %123 = shalt.err (!%p120_p10)
}
  0x19   :  { %s124_s30 = scalar_lea.vmem %s27_s12, 256  ;;  %p129_p12 = scmp.lt.s32.totalorder %s27_s12, %s27_s12 }
  0x1a   :  { %p125_p11 = scmp.ne.s32.totalorder %s27_s12, %s124_s30  ;;  %p130_p13 = scmp.lt.s32.totalorder %s124_s30, %s124_s30 }
  0x1c   :  { %p131_p0 = por %p130_p13, %p129_p12 }
  0x1e   :  { %p132_p1 = pnand %p131_p0, %p125_p11 }
  0x20   :  { %135 = shalt.err (!%p132_p1)
}
  0x21   :  { %29 = dma.hbm_to_vmem [thread:$0]  %s220_s1, 256, %s27_s12, [#allocation6]  }
  0x22   :  { %158 = dma.done.wait [#allocation3], 32  }
  0x23   :  { %159 = vsyncadd [#allocation3], 4294967264 }
  0x24   :  { %160 = dma.done.wait [#allocation6], 256  }
  0x25   :  { %161 = vsyncadd [#allocation6], 4294967040  ;;  %v36_v0 = vld [vmem:[#allocation2] sm:$0x3]  ;;  %v47_v5 = vlaneseq  ;;  %v44_v10 = vld [vmem:[#allocation5] sm:$0xff]  ;;  %s166_s4 = smov [#allocation7]  }
  0x26   :  { %v37_v1 = vsub.f32 0.0, %v36_v0  ;;  %v45_v11 = vld [vmem:[#allocation5 + $0x8] sm:$0xff]  ;;  %s71_s1 = sshll.u32 %s166_s4, 4  ;;  %v167_v14 = vmov 0.0   ;;  %s72_s1 = int_to_ptr.vmem [resolvable:$true] %s71_s1 }
  0x27   :  { %v48_v6 = vshrl.u32 %v47_v5, 7  ;;  %s136_s5 = scalar_lea.vmem %s72_s1, 256  ;;  %p141_p3 = scmp.lt.s32.totalorder %s72_s1, %s72_s1 }
  0x28   :  { %v81_v2 = vmul.f32 -1.442695, %v37_v1  ;;  %p137_p2 = scmp.ne.s32.totalorder %s72_s1, %s136_s5  ;;  %p142_p4 = scmp.lt.s32.totalorder %s136_s5, %s136_s5 }
  0x29   :  { %v49_v7 = vsub.s32 0, %v48_v6  ;;  %v53_v8 = vsub.s32 1, %v48_v6 }
  0x2a   :  { %88 = vpow2.f32 %v81_v2  ;;  %p143_p5 = por %p142_p4, %p141_p3 }
  0x2c   :  { %p144_p6 = pnand %p143_p5, %p137_p2 }
  0x34   :  { %v89_v3 = vpop.eup %88 }
  0x35   :  { %v41_v4 = vadd.f32 1.0, %v89_v3 }
  0x37   :  { %90 = vrcp.f32 %v41_v4 }
  0x41   :  { %v91_v9 = vpop.eup %90 }
  0x42   :  { %v50_v12 = vrot.slane %v91_v9, %v49_v7  ;;  %v54_v13 = vrot.slane %v91_v9, %v53_v8 }
  0x44   :  { %vm57_vm0 = vcmp.gt.f32.partialorder %v44_v10, %v50_v12  ;;  %vm58_vm1 = vcmp.gt.f32.partialorder %v45_v11, %v54_v13 }
  0x45   :  { %v82_v15 = vsel %vm57_vm0, 1.0, %v167_v14  ;;  %v83_v16 = vsel %vm58_vm1, 1.0, %v167_v14 }
  0x46   :  { %63 = vst [vmem:[#allocation7] sm:$0xff] %v82_v15  ;;  %64 = vst [vmem:[#allocation7 + $0x8] sm:$0xff] %v83_v16 }
  0x47   :  { %147 = shalt.err (!%p144_p6)
}
  0x48   :  { %s148_s8 = scalar_lea.hbm %s221_s2, 256 }
  0x49   :  { %p149_p7 = scmp.ne.s32.totalorder %s221_s2, %s148_s8  ;;  %p152_p8 = scmp.lt.u32.totalorder %s148_s8, %s221_s2 }
  0x4b   :  { %p154_p9 = pnand %p152_p8, %p149_p7 }
  0x4d   :  { %157 = shalt.err (!%p154_p9)
}
  0x4e   :  { %74 = dma.vmem_to_hbm [thread:$0]  %s72_s1, 256, %s221_s2, [#allocation4]  }
  0x4f   :  { %162 = dma.done.wait [#allocation4], 256  }
  0x50   :  { %163 = vsyncadd [#allocation4], 4294967040 }
  0x51   :  { %78 = vsyncpa [#allocation3], 1 }
  0x52   :  { %79 = vsyncpa [#allocation6], 1 }
  0x53   :  { %80 = vsyncpa [#allocation4], 1 }

</bundles_post_ra>
